<compile_context>
chip_gen: v5e
topology: v5e:2x2
jax: 0.10.0
libtpu: 0.0.40
codegen_flags: <defaults>
</compile_context>

<pallas_src>
import jax
import jax.numpy as jnp
from jax import lax
from jax.experimental import pallas as pl
from jax.experimental.pallas import tpu as pltpu

EMBED_SIZE = 128          # reference module uses 512; small demo size
BN_EPS = 0.001


# ---------------------------------------------------------------------------
# Fused kernel: two tiled encoder matmuls (reduction over K) + siamese head.
# ---------------------------------------------------------------------------
def _fused_kernel(x1_ref, x2_ref, w_ref, benc_ref, w1_ref, b1_ref,
                  w2_ref, b2_ref, out_ref, acc1_ref, acc2_ref):
    k = pl.program_id(1)

    @pl.when(k == 0)
    def _init():
        acc1_ref[...] = jnp.zeros_like(acc1_ref)
        acc2_ref[...] = jnp.zeros_like(acc2_ref)

    # Encoder stub matmul tile: bf16 inputs, f32 accumulation on the MXU.
    # w_enc tile is loaded from HBM once per grid step and reused for both inputs.
    w = w_ref[...]
    acc1_ref[...] += jnp.dot(x1_ref[...], w, preferred_element_type=jnp.float32)
    acc2_ref[...] += jnp.dot(x2_ref[...], w, preferred_element_type=jnp.float32)

    @pl.when(k == pl.num_programs(1) - 1)
    def _head():
        b_enc = benc_ref[...]
        e1 = acc1_ref[...] + b_enc          # (tm, E)
        e2 = acc2_ref[...] + b_enc

        # x1 = e1^2 + e2^2 ; x2 = (e1 - e2)^2 ; lane-concat -> (tm, 2E)
        f1 = e1 * e1 + e2 * e2
        d = e1 - e2
        f2 = d * d
        feats = jnp.concatenate([f1, f2], axis=-1)

        # fc1 with BatchNorm(eval) folded into w1/b1 (done in the wrapper), ReLU.
        h = (jnp.dot(feats, w1_ref[...], preferred_element_type=jnp.float32)
             + b1_ref[...])
        h = jnp.maximum(h, 0.0)

        # fc2 ([E] -> 1): multiply + lane reduction instead of an N=1 matmul.
        logit = jnp.sum(h * w2_ref[...], axis=-1, keepdims=True) + b2_ref[...]
        # TODO(synk): output is (tm, 1); if ever run at serving batch sizes,
        # switch to a lane-dense (1, tm) slab to avoid masked partial stores.
        out_ref[...] = jax.nn.sigmoid(logit).astype(out_ref.dtype)


# ---------------------------------------------------------------------------
# Wrapper: padding, tiling, BN folding, bf16 casts, single pallas_call.
# ---------------------------------------------------------------------------
def _pad_to(a, axis, target):
    pad = target - a.shape[axis]
    if pad <= 0:
        return a
    widths = [(0, 0)] * a.ndim
    widths[axis] = (0, pad)
    return jnp.pad(a, widths)


def model_forward(x1_nchw, x2_nchw, params):
    B = x1_nchw.shape[0]
    x1f = x1_nchw.reshape(B, -1).astype(jnp.float32)
    x2f = x2_nchw.reshape(B, -1).astype(jnp.float32)
    Din = x1f.shape[1]
    E = params["w_enc"].shape[1]

    # --- tile sizes: sized so double-buffered tiles stay far below the 32 MiB
    #     default scoped VMEM limit (safe on v7x's 64 MiB parts as well). ---
    if B <= 128:
        B_pad = ((B + 7) // 8) * 8
        tm = B_pad
    else:
        B_pad = ((B + 127) // 128) * 128
        tm = 128
    if Din <= 512:
        Din_pad = ((Din + 127) // 128) * 128
        tk = Din_pad
    else:
        tk = 512
        Din_pad = ((Din + tk - 1) // tk) * tk

    # bf16 activations / encoder weight (zero-padded along B and Din).
    x1p = _pad_to(_pad_to(x1f, 0, B_pad), 1, Din_pad).astype(jnp.bfloat16)
    x2p = _pad_to(_pad_to(x2f, 0, B_pad), 1, Din_pad).astype(jnp.bfloat16)
    w_enc = _pad_to(params["w_enc"], 0, Din_pad).astype(jnp.bfloat16)
    b_enc = params["b_enc"]

    # Fold BatchNorm1d (eval mode) into fc1: scale = gamma / sqrt(var + eps).
    scale = params["gamma"] * lax.rsqrt(params["var"] + BN_EPS)        # (1, E)
    w1_f = params["w1"] * scale                                        # (2E, E)
    b1_f = (params["b1"] - params["mean"]) * scale + params["beta"]    # (1, E)
    w2_row = params["w2"].reshape(1, E)                                # (1, E)
    b2 = params["b2"]                                                  # (1, 1)

    num_m = B_pad // tm
    num_k = Din_pad // tk

    flops = (2 * 2 * B_pad * Din_pad * E      # two encoder matmuls
             + 2 * B_pad * (2 * E) * E        # fc1
             + 2 * B_pad * E)                 # fc2 reduction
    bytes_accessed = (2 * B_pad * Din_pad * 2     # x1 + x2 (bf16)
                      + Din_pad * E * 2           # w_enc (bf16)
                      + (2 * E * E + 4 * E + 1) * 4
                      + B_pad * 4)

    grid_spec = pltpu.PrefetchScalarGridSpec(
        num_scalar_prefetch=0,
        grid=(num_m, num_k),
        in_specs=[
            pl.BlockSpec((tm, tk), lambda i, k: (i, k)),      # x1 tile
            pl.BlockSpec((tm, tk), lambda i, k: (i, k)),      # x2 tile
            pl.BlockSpec((tk, E), lambda i, k: (k, 0)),       # w_enc tile
            pl.BlockSpec((1, E), lambda i, k: (0, 0)),        # b_enc
            pl.BlockSpec((2 * E, E), lambda i, k: (0, 0)),    # fc1 weight (BN folded)
            pl.BlockSpec((1, E), lambda i, k: (0, 0)),        # fc1 bias (BN folded)
            pl.BlockSpec((1, E), lambda i, k: (0, 0)),        # fc2 weight row
            pl.BlockSpec((1, 1), lambda i, k: (0, 0)),        # fc2 bias
        ],
        out_specs=pl.BlockSpec((tm, 1), lambda i, k: (i, 0)),
        scratch_shapes=[pltpu.VMEM((tm, E), jnp.float32),
                        pltpu.VMEM((tm, E), jnp.float32)],
    )

    out = pl.pallas_call(
        _fused_kernel,
        out_shape=jax.ShapeDtypeStruct((B_pad, 1), jnp.float32),
        grid_spec=grid_spec,
        compiler_params=pltpu.CompilerParams(
            dimension_semantics=("parallel", "arbitrary"),
            vmem_limit_bytes=32 * 1024 * 1024),
        cost_estimate=pl.CostEstimate(flops=flops,
                                      transcendentals=B_pad,
                                      bytes_accessed=bytes_accessed),
    )(x1p, x2p, w_enc, b_enc, w1_f, b1_f, w2_row, b2)

    return out[:B]


# ---------------------------------------------------------------------------
# Parameters.
# TODO(synk): InceptionResnetV1 backbone has no clean Pallas equivalent here;
#             replaced with a deterministic linear projection stub (w_enc/b_enc).
# ---------------------------------------------------------------------------
def init_params(key, d_in, embed_size=EMBED_SIZE):
    ks = jax.random.split(key, 6)
    E = embed_size
    s_enc = 1.0 / jnp.sqrt(jnp.float32(d_in))
    s1 = 1.0 / jnp.sqrt(jnp.float32(2 * E))
    s2 = 1.0 / jnp.sqrt(jnp.float32(E))
    return {
        # encoder stub
        "w_enc": jax.random.uniform(ks[0], (d_in, E), jnp.float32, -s_enc, s_enc),
        "b_enc": jax.random.uniform(ks[1], (1, E), jnp.float32, -s_enc, s_enc),
        # fc1 ([in=2E, out=E])
        "w1": jax.random.uniform(ks[2], (2 * E, E), jnp.float32, -s1, s1),
        "b1": jax.random.uniform(ks[3], (1, E), jnp.float32, -s1, s1),
        # BatchNorm1d (fresh module: gamma=1, beta=0, running stats 0/1)
        "gamma": jnp.ones((1, E), jnp.float32),
        "beta": jnp.zeros((1, E), jnp.float32),
        "mean": jnp.zeros((1, E), jnp.float32),
        "var": jnp.ones((1, E), jnp.float32),
        # fc2
        "w2": jax.random.uniform(ks[4], (E, 1), jnp.float32, -s2, s2),
        "b2": jax.random.uniform(ks[5], (1, 1), jnp.float32, -s2, s2),
    }


if __name__ == "__main__":
    key = jax.random.PRNGKey(0)
    k_x1, k_x2, k_p = jax.random.split(key, 3)

    B, C, H, W = 8, 4, 16, 16
    x1 = jax.random.normal(k_x1, (B, C, H, W), jnp.float32)
    x2 = jax.random.normal(k_x2, (B, C, H, W), jnp.float32)

    params = init_params(k_p, d_in=C * H * W, embed_size=EMBED_SIZE)

    out = model_forward(x1, x2, params)
    jax.block_until_ready(out)
    assert out.shape == (B, 1)
    assert bool(jnp.all(jnp.isfinite(out)))
    assert bool(jnp.all((out >= 0.0) & (out <= 1.0)))
    print("KERNEL_OK")
</pallas_src>

<mosaic_0001>
module attributes {stable_mosaic.version = 11 : i64} {
  func.func @_fused_kernel(%arg0: i32, %arg1: i32, %arg2: memref<8x512xbf16, #tpu.memory_space<vmem>>, %arg3: memref<8x512xbf16, #tpu.memory_space<vmem>>, %arg4: memref<512x128xbf16, #tpu.memory_space<vmem>>, %arg5: memref<1x128xf32, #tpu.memory_space<vmem>>, %arg6: memref<256x128xf32, #tpu.memory_space<vmem>>, %arg7: memref<1x128xf32, #tpu.memory_space<vmem>>, %arg8: memref<1x128xf32, #tpu.memory_space<vmem>>, %arg9: memref<1x1xf32, #tpu.memory_space<vmem>>, %arg10: memref<8x1xf32, #tpu.memory_space<vmem>>, %arg11: memref<8x128xf32, #tpu.memory_space<vmem>>, %arg12: memref<8x128xf32, #tpu.memory_space<vmem>>) attributes {dimension_semantics = [#tpu.dimension_semantics<parallel>, #tpu.dimension_semantics<arbitrary>], iteration_bounds = array<i64: 1, 2>, scalar_prefetch = 0 : i64, scratch_operands = 2 : i64, tpu.core_type = #tpu.core_type<tc>, window_params = [{transform_indices = @transform_0, window_bounds = array<i64: 8, 512>}, {transform_indices = @transform_1, window_bounds = array<i64: 8, 512>}, {transform_indices = @transform_2, window_bounds = array<i64: 512, 128>}, {pipeline_mode = #tpu.pipeline_mode<synchronous>, transform_indices = @transform_3, window_bounds = array<i64: 1, 128>}, {pipeline_mode = #tpu.pipeline_mode<synchronous>, transform_indices = @transform_4, window_bounds = array<i64: 256, 128>}, {pipeline_mode = #tpu.pipeline_mode<synchronous>, transform_indices = @transform_5, window_bounds = array<i64: 1, 128>}, {pipeline_mode = #tpu.pipeline_mode<synchronous>, transform_indices = @transform_6, window_bounds = array<i64: 1, 128>}, {pipeline_mode = #tpu.pipeline_mode<synchronous>, transform_indices = @transform_7, window_bounds = array<i64: 1, 1>}, {transform_indices = @transform_8, window_bounds = array<i64: 8, 1>}]} {
    %c0_i32 = arith.constant 0 : i32
    %0 = arith.cmpi eq, %arg1, %c0_i32 : i32
    %1 = arith.extui %0 : i1 to i32
    %c0_i32_0 = arith.constant 0 : i32
    %2 = arith.cmpi ne, %1, %c0_i32_0 : i32
    scf.if %2 {
      %cst_16 = arith.constant 0.000000e+00 : f32
      %17 = vector.broadcast %cst_16 : f32 to vector<8x128xf32>
      %c0_17 = arith.constant 0 : index
      %c0_18 = arith.constant 0 : index
      %18 = vector.load %arg11[%c0_17, %c0_18] : memref<8x128xf32, #tpu.memory_space<vmem>>, vector<8x128xf32>
      tpu.vector_store %arg11[%c0_17, %c0_18], %17 {strides = array<i32>} : memref<8x128xf32, #tpu.memory_space<vmem>>, vector<8x128xf32>,
      %cst_19 = arith.constant 0.000000e+00 : f32
      %19 = vector.broadcast %cst_19 : f32 to vector<8x128xf32>
      %c0_20 = arith.constant 0 : index
      %c0_21 = arith.constant 0 : index
      %20 = vector.load %arg12[%c0_20, %c0_21] : memref<8x128xf32, #tpu.memory_space<vmem>>, vector<8x128xf32>
      tpu.vector_store %arg12[%c0_20, %c0_21], %19 {strides = array<i32>} : memref<8x128xf32, #tpu.memory_space<vmem>>, vector<8x128xf32>,
    } else {
    }
    %c0 = arith.constant 0 : index
    %c0_1 = arith.constant 0 : index
    %3 = vector.load %arg4[%c0, %c0_1] : memref<512x128xbf16, #tpu.memory_space<vmem>>, vector<512x128xbf16>
    %c0_2 = arith.constant 0 : index
    %c0_3 = arith.constant 0 : index
    %4 = vector.load %arg11[%c0_2, %c0_3] : memref<8x128xf32, #tpu.memory_space<vmem>>, vector<8x128xf32>
    %c0_4 = arith.constant 0 : index
    %c0_5 = arith.constant 0 : index
    %5 = vector.load %arg2[%c0_4, %c0_5] : memref<8x512xbf16, #tpu.memory_space<vmem>>, vector<8x512xbf16>
    %cst = arith.constant dense<0.000000e+00> : vector<8x128xf32>
    %6 = tpu.matmul %5, %3, %cst {dimension_numbers = #tpu.dot_dimension_numbers<[1], [0], [0], [1], [0, 0, 1, 1], [], []>} : vector<8x512xbf16>, vector<512x128xbf16>, vector<8x128xf32> -> vector<8x128xf32>
    %7 = arith.addf %4, %6 : vector<8x128xf32>
    %c0_6 = arith.constant 0 : index
    %c0_7 = arith.constant 0 : index
    %8 = vector.load %arg11[%c0_6, %c0_7] : memref<8x128xf32, #tpu.memory_space<vmem>>, vector<8x128xf32>
    tpu.vector_store %arg11[%c0_6, %c0_7], %7 {strides = array<i32>} : memref<8x128xf32, #tpu.memory_space<vmem>>, vector<8x128xf32>,
    %c0_8 = arith.constant 0 : index
    %c0_9 = arith.constant 0 : index
    %9 = vector.load %arg12[%c0_8, %c0_9] : memref<8x128xf32, #tpu.memory_space<vmem>>, vector<8x128xf32>
    %c0_10 = arith.constant 0 : index
    %c0_11 = arith.constant 0 : index
    %10 = vector.load %arg3[%c0_10, %c0_11] : memref<8x512xbf16, #tpu.memory_space<vmem>>, vector<8x512xbf16>
    %cst_12 = arith.constant dense<0.000000e+00> : vector<8x128xf32>
    %11 = tpu.matmul %10, %3, %cst_12 {dimension_numbers = #tpu.dot_dimension_numbers<[1], [0], [0], [1], [0, 0, 1, 1], [], []>} : vector<8x512xbf16>, vector<512x128xbf16>, vector<8x128xf32> -> vector<8x128xf32>
    %12 = arith.addf %9, %11 : vector<8x128xf32>
    %c0_13 = arith.constant 0 : index
    %c0_14 = arith.constant 0 : index
    %13 = vector.load %arg12[%c0_13, %c0_14] : memref<8x128xf32, #tpu.memory_space<vmem>>, vector<8x128xf32>
    tpu.vector_store %arg12[%c0_13, %c0_14], %12 {strides = array<i32>} : memref<8x128xf32, #tpu.memory_space<vmem>>, vector<8x128xf32>,
    %c1_i32 = arith.constant 1 : i32
    %14 = arith.cmpi eq, %arg1, %c1_i32 : i32
    %15 = arith.extui %14 : i1 to i32
    %c0_i32_15 = arith.constant 0 : i32
    %16 = arith.cmpi ne, %15, %c0_i32_15 : i32
    scf.if %16 {
      %c0_16 = arith.constant 0 : index
      %c0_17 = arith.constant 0 : index
      %17 = vector.load %arg5[%c0_16, %c0_17] : memref<1x128xf32, #tpu.memory_space<vmem>>, vector<1x128xf32>
      %c0_18 = arith.constant 0 : index
      %c0_19 = arith.constant 0 : index
      %18 = vector.load %arg11[%c0_18, %c0_19] : memref<8x128xf32, #tpu.memory_space<vmem>>, vector<8x128xf32>
      %19 = vector.broadcast %17 : vector<1x128xf32> to vector<8x128xf32>
      %20 = arith.addf %18, %19 : vector<8x128xf32>
      %c0_20 = arith.constant 0 : index
      %c0_21 = arith.constant 0 : index
      %21 = vector.load %arg12[%c0_20, %c0_21] : memref<8x128xf32, #tpu.memory_space<vmem>>, vector<8x128xf32>
      %22 = vector.broadcast %17 : vector<1x128xf32> to vector<8x128xf32>
      %23 = arith.addf %21, %22 : vector<8x128xf32>
      %24 = arith.mulf %20, %20 : vector<8x128xf32>
      %25 = arith.mulf %23, %23 : vector<8x128xf32>
      %26 = arith.addf %24, %25 : vector<8x128xf32>
      %27 = arith.subf %20, %23 : vector<8x128xf32>
      %28 = arith.mulf %27, %27 : vector<8x128xf32>
      %29 = tpu.concatenate %26, %28 in 1 : vector<8x128xf32>, vector<8x128xf32> -> vector<8x256xf32>
      %c0_22 = arith.constant 0 : index
      %c0_23 = arith.constant 0 : index
      %30 = vector.load %arg6[%c0_22, %c0_23] : memref<256x128xf32, #tpu.memory_space<vmem>>, vector<256x128xf32>
      %cst_24 = arith.constant dense<0.000000e+00> : vector<8x128xf32>
      %31 = tpu.matmul %29, %30, %cst_24 {dimension_numbers = #tpu.dot_dimension_numbers<[1], [0], [0], [1], [0, 0, 1, 1], [], []>} : vector<8x256xf32>, vector<256x128xf32>, vector<8x128xf32> -> vector<8x128xf32>
      %c0_25 = arith.constant 0 : index
      %c0_26 = arith.constant 0 : index
      %32 = vector.load %arg7[%c0_25, %c0_26] : memref<1x128xf32, #tpu.memory_space<vmem>>, vector<1x128xf32>
      %33 = vector.broadcast %32 : vector<1x128xf32> to vector<8x128xf32>
      %34 = arith.addf %31, %33 : vector<8x128xf32>
      %cst_27 = arith.constant 0.000000e+00 : f32
      %35 = vector.broadcast %cst_27 : f32 to vector<8x128xf32>
      %36 = arith.maximumf %34, %35 : vector<8x128xf32>
      %c0_28 = arith.constant 0 : index
      %c0_29 = arith.constant 0 : index
      %37 = vector.load %arg8[%c0_28, %c0_29] : memref<1x128xf32, #tpu.memory_space<vmem>>, vector<1x128xf32>
      %38 = vector.broadcast %37 : vector<1x128xf32> to vector<8x128xf32>
      %39 = arith.mulf %36, %38 : vector<8x128xf32>
      %cst_30 = arith.constant dense<0.000000e+00> : vector<8xf32>
      %40 = vector.multi_reduction <add>, %39, %cst_30 [1] : vector<8x128xf32> to vector<8xf32>
      %41 = vector.shape_cast %40 : vector<8xf32> to vector<8x1xf32>
      %c0_31 = arith.constant 0 : index
      %c0_32 = arith.constant 0 : index
      %42 = vector.load %arg9[%c0_31, %c0_32] : memref<1x1xf32, #tpu.memory_space<vmem>>, vector<1x1xf32>
      %43 = vector.broadcast %42 : vector<1x1xf32> to vector<8x1xf32>
      %44 = arith.addf %41, %43 : vector<8x1xf32>
      %45 = arith.negf %44 : vector<8x1xf32>
      %46 = math.exp %45 : vector<8x1xf32>
      %cst_33 = arith.constant 1.000000e+00 : f32
      %47 = vector.broadcast %cst_33 : f32 to vector<8x1xf32>
      %48 = arith.addf %47, %46 : vector<8x1xf32>
      %49 = arith.divf %47, %48 : vector<8x1xf32>
      %c0_34 = arith.constant 0 : index
      %c0_35 = arith.constant 0 : index
      %50 = vector.load %arg10[%c0_34, %c0_35] : memref<8x1xf32, #tpu.memory_space<vmem>>, vector<8x1xf32>
      tpu.vector_store %arg10[%c0_34, %c0_35], %49 {strides = array<i32>} : memref<8x1xf32, #tpu.memory_space<vmem>>, vector<8x1xf32>,
    } else {
    }
    return
  }
  func.func @transform_0(%arg0: i32, %arg1: i32) -> (i32, i32) {
    %c0_i32 = arith.constant 0 : i32
    return %arg0, %arg1 : i32, i32
  }
  func.func @transform_1(%arg0: i32, %arg1: i32) -> (i32, i32) {
    %c0_i32 = arith.constant 0 : i32
    return %arg0, %arg1 : i32, i32
  }
  func.func @transform_2(%arg0: i32, %arg1: i32) -> (i32, i32) {
    %c0_i32 = arith.constant 0 : i32
    %c0_i32_0 = arith.constant 0 : i32
    return %arg1, %c0_i32 : i32, i32
  }
  func.func @transform_3(%arg0: i32, %arg1: i32) -> (i32, i32) {
    %c0_i32 = arith.constant 0 : i32
    %c0_i32_0 = arith.constant 0 : i32
    %c0_i32_1 = arith.constant 0 : i32
    return %c0_i32, %c0_i32_0 : i32, i32
  }
  func.func @transform_4(%arg0: i32, %arg1: i32) -> (i32, i32) {
    %c0_i32 = arith.constant 0 : i32
    %c0_i32_0 = arith.constant 0 : i32
    %c0_i32_1 = arith.constant 0 : i32
    return %c0_i32, %c0_i32_0 : i32, i32
  }
  func.func @transform_5(%arg0: i32, %arg1: i32) -> (i32, i32) {
    %c0_i32 = arith.constant 0 : i32
    %c0_i32_0 = arith.constant 0 : i32
    %c0_i32_1 = arith.constant 0 : i32
    return %c0_i32, %c0_i32_0 : i32, i32
  }
  func.func @transform_6(%arg0: i32, %arg1: i32) -> (i32, i32) {
    %c0_i32 = arith.constant 0 : i32
    %c0_i32_0 = arith.constant 0 : i32
    %c0_i32_1 = arith.constant 0 : i32
    return %c0_i32, %c0_i32_0 : i32, i32
  }
  func.func @transform_7(%arg0: i32, %arg1: i32) -> (i32, i32) {
    %c0_i32 = arith.constant 0 : i32
    %c0_i32_0 = arith.constant 0 : i32
    %c0_i32_1 = arith.constant 0 : i32
    return %c0_i32, %c0_i32_0 : i32, i32
  }
  func.func @transform_8(%arg0: i32, %arg1: i32) -> (i32, i32) {
    %c0_i32 = arith.constant 0 : i32
    %c0_i32_0 = arith.constant 0 : i32
    return %arg0, %c0_i32 : i32, i32
  }
}

</mosaic_0001>

<bundles_post_ra>
// kernel: tpu_custom_call.1
= control target key start
LH: loop header
LB: loop body
LE: loop exit
PB: predicated region body
PF: predicated region fallthrough
CT: control target
= control target key end

     0   :  { %s1895_s0 = inlined_call_operand.hbm [shape: bf16[8,1024], index: 0, kind: input, shape index: {}]   ;;  %s1896_s1 = inlined_call_operand.hbm [shape: bf16[8,1024], index: 1, kind: input, shape index: {}]   ;;  %s1897_s2 = inlined_call_operand.hbm [shape: bf16[1024,128], index: 2, kind: input, shape index: {}]   ;;  %s1898_s3 = inlined_call_operand.vmem [shape: f32[1,128], index: 3, kind: input, shape index: {}]   ;;  %s1899_s4 = inlined_call_operand.hbm [shape: f32[256,128], index: 4, kind: input, shape index: {}]   ;;  %s1900_s5 = inlined_call_operand.vmem [shape: f32[1,128], index: 5, kind: input, shape index: {}]   ;;  %s1901_s6 = inlined_call_operand.vmem [shape: f32[1,128], index: 6, kind: input, shape index: {}]   ;;  %s1902_s7 = inlined_call_operand.<no memory space> [shape: f32[1,1], index: 7, kind: input, shape index: {}]   ;;  %s1903_s8 = inlined_call_operand.vmem [shape: f32[8,1], index: 8, kind: output, shape index: {}]  }
   0x1   :  { %1908 = sst [smem:[#allocation18_spill]] %s1895_s0  ;;  %v13_v0 = vstv %s1902_s7 }
   0x2   :  { %1909 = sst [smem:[#allocation19_spill]] %s1896_s1  ;;  %14 = vst [vmem:[#allocation4] sm:$0x1] %v13_v0 }
   0x3   :  { %1910 = sst [smem:[#allocation20_spill]] %s1899_s4 }
   0x4   :  { %1911 = sst [smem:[#allocation21_spill]] %s1901_s6 }
   0x5   :  { %1912 = sst [smem:[#allocation22_spill]] %s1903_s8 }
   0x6   :  { %15 = vsyncpa [#allocation6], 0 }
   0x7   :  { %17 = vsyncpa [#allocation6 + $0x1], 0 }
   0x8   :  { %18 = vsyncpa [#allocation8], 0 }
   0x9   :  { %20 = vsyncpa [#allocation8 + $0x1], 0 }
   0xa   :  { %21 = vsyncpa [#allocation11], 0  ;;  %s1615_s29 = smov 0   ;;  %s1617_s30 = smov 0  }
   0xb   :  { %s1619_s9 = smov 0   ;;  %s1621_s10 = smov 0  }
   0xc   :  { %s1623_s11 = smov 0   ;;  %s1625_s12 = smov 0  }
   0xd LB: > { %1913 = sst [smem:[#allocation15_spill]] %s1547_s9  ;;  %s36_s7 = sadd.s32 1, %s1555_s11  ;;  %s1559_s12 = sphi %s1625_s12, %s27_s12   ;;  %s1555_s11 = sphi %s1623_s11, %s1933_s11   ;;  %s1551_s10 = sphi %s1621_s10, %s1932_s10   ;;  %s1547_s9 = sphi %s1619_s9, %s1928_s9   ;;  %s1543_s30 = sphi %s1617_s30, %s1931_s30   ;;  %s1539_s29 = sphi %s1615_s29, %s1930_s29  }
   0xe   : > { %s48_s13 = sadd.s32 1, %s1547_s9  ;;  %p37_p0 = scmp.ge.s32.totalorder %s36_s7, 2 }
   0xf   : > { %p55_p1 = scmp.ne.s32.totalorder %s1547_s9, %s1543_s30  ;;  %p56_p2 = scmp.eq.s32.totalorder %s1559_s12, 0 }
  0x10   : > { %p61_p3 = scmp.ne.s32.totalorder %s1543_s30, %s1539_s29  ;;  %s1935_s7 = smov (%p37_p0, %s36_s7), 0 }
  0x11   : > { %1914 = sst [smem:[#allocation16_spill]] %s1935_s7  ;;  %p57_p4 = por %p56_p2, %p55_p1 }
  0x12   : > { %s44_s14 = ssub.s32 %s1555_s11, %s1935_s7  ;;  %p1317_p5 = scmp.lt.s32.totalorder %s1559_s12, 2 }
  0x13   : > { %p46_p6 = scmp.eq.s32.totalorder %s44_s14, 0  ;;  %s1658_s15 = sand.u32 1, %s1547_s9  }
  0x14   : > { %s1905_s16 = sshll.u32 %s1658_s15, 4  ;;  %s1257_s17 = sshll.u32 %s1555_s11, 4 }
  0x15   : > { %s1663_s18 = scalar_select %p46_p6, %s1547_s9, %s48_s13  }
  0x16   : > { %p1665_p7 = pnand %p1317_p5, %p57_p4  ;;  %s318_s20 = sand.u32 1, %s1559_s12  }
  0x17   : > { %1915 = sst [smem:[#allocation17_spill]] %s1663_s18  ;;  %s322_s25 = scalar_lea.vmem [#allocation7], %s1905_s16 }
  0x18   : > { %s1917_s1 = sld [smem:[#allocation19_spill]]  ;;  %s333_s26 = sshll.u32 %s322_s25, 4  ;;  %s334_s26 = int_to_ptr.vmem [resolvable:$true] %s333_s26 }
  0x19   : > { %s1677_s27 = scalar_lea.sflag [#allocation8], %s318_s20  ;;  %s1115_s28 = sshll.u32 %s1658_s15, 8 }
  0x1a   : > { %s344_s13 = scalar_lea.vmem [#allocation9], %s1115_s28  ;;  %s1904_s21 = sadd.s32 4294967295, %s1559_s12  }
  0x1b   : > { %s352_s14 = sshll.u32 %s344_s13, 4  ;;  %p1688_p8 = scmp.eq.s32.totalorder %s1904_s21, 0  ;;  %s1684_s14 = int_to_ptr.vmem [resolvable:$true] %s352_s14 }
  0x1c   : > { %p1106_p9 = scmp.ge.s32.totalorder %s1559_s12, 1  ;;  %p257_p10 = scmp.lt.s32.totalorder %s1559_s12, 3 }
  0x1d   : > { %p1699_p11 = por %p1688_p8, %p61_p3  ;;  %s1921_s4 = sld [smem:[#allocation20_spill]] }
  0x1e   : > { %s329_s23 = scalar_lea.hbm %s1917_s1, %s1257_s17  ;;  %p1703_p12 = pnand %p1106_p9, %p257_p10 }
  0x1f   : > { %s331_s24 = sshll.u32 %s329_s23, 4  ;;  %s1561_s29 = smov [#allocation10]   ;;  %s332_s24 = int_to_ptr.hbm [resolvable:$true] %s331_s24 }
  0x20   : > { %1312 = dma.hbm_to_vmem [thread:$0]  (!%p1665_p7), %s332_s24, 256, %s334_s26, %s1677_s27  }
  0x21   : > { %p1302_p13 = pneg %p1703_p12  ;;  %s273_s28 = sshll.u32 %s1561_s29, 4  ;;  %s274_s28 = int_to_ptr.vmem [resolvable:$true] %s273_s28 }
  0x22   : > { %s1922_s0 = sld [smem:[#allocation18_spill]]  ;;  %s1562_s1 = smov 128  }
  0x23   : > { %s271_s26 = sshll.u32 %s1921_s4, 4  ;;  %p1303_p0 = pnand %p1302_p13, %p1688_p8  ;;  %s272_s26 = int_to_ptr.hbm [resolvable:$true] %s271_s26 }
  0x24   : > { %s1563_s24 = smov 8   ;;  %s1923_s4 = sshll.u32 %s1658_s15, 4 }
  0x25   : > { %1305 = dma.hbm_to_vmem [thread:$0]  (!%p1303_p0), %s272_s26, 4096, %s274_s28, [#allocation11], %s1562_s1, %s1562_s1, %s1563_s24  }
  0x26   : > { %s300_s7 = scalar_lea.vmem [#allocation5], %s1923_s4  ;;  %s297_s29 = scalar_lea.sflag [#allocation6], %s1658_s15 }
  0x27   : > { %s311_s18 = sshll.u32 %s300_s7, 4  ;;  %s1259_s9 = sshll.u32 %s1555_s11, 8  ;;  %s312_s18 = int_to_ptr.vmem [resolvable:$true] %s311_s18 }
  0x28   : > { %s307_s16 = scalar_lea.hbm %s1922_s0, %s1257_s17  ;;  %s349_s17 = scalar_lea.hbm %s1897_s2, %s1259_s9 }
  0x29   : > { %s309_s25 = sshll.u32 %s307_s16, 4  ;;  %s350_s21 = sshll.u32 %s349_s17, 4  ;;  %s310_s25 = int_to_ptr.hbm [resolvable:$true] %s309_s25  ;;  %s351_s21 = int_to_ptr.hbm [resolvable:$true] %s350_s21 }
  0x2a   : > { %1309 = dma.hbm_to_vmem [thread:$0]  (!%p1665_p7), %s310_s25, 256, %s312_s18, %s297_s29  }
  0x2b   : > { %s1564_s13 = smov 64   ;;  %s1565_s0 = smov 4  }
  0x2c   : > { %1315 = dma.hbm_to_vmem [thread:$0]  (!%p1665_p7), %s351_s21, 4096, %s1684_s14, %s1677_s27, %s1564_s13, %s1564_s13, %s1565_s0  }
  0x2d   : > { %364 = sbr.rel (%p1703_p12) target bundleno = 588 (0x24c), region = 52  ;;  %s366_s1 = sand.u32 (!%p1703_p12), 1, %s1543_s30  }
  0x2e   : > { %s1119_s4 = sshll.u32 (!%p1703_p12), %s366_s1, 4  ;;  %s367_s7 = scalar_lea.sflag (!%p1703_p12), [#allocation6], %s366_s1 }
  0x2f   : > { %s1735_s15 = scalar_lea.vmem (!%p1703_p12), [#allocation5], %s1119_s4 }
  0x32   : > { %1526 = dma.done.wait (%p1699_p11), %s367_s7, 256  }
  0x33   : > { %1528 = vsyncadd (%p1699_p11), %s367_s7, 4294967040  ;;  %s1924_s6 = sadd.s32 4294967295, %s1559_s12   ;;  %s1743_s9 = scalar_lea.vmem [#allocation7], %s1119_s4 }
  0x34   : > { %s376_s8 = sand.u32 1, %s1924_s6  }
  0x35   : > { %s377_s0 = scalar_lea.sflag [#allocation8], %s376_s8 }
  0x36   : > { %1530 = dma.done.wait (%p1699_p11), %s377_s0, 4352  }
  0x37   : > { %1532 = vsyncadd (%p1699_p11), %s377_s0, 4294962944  ;;  %s1121_s16 = sshll.u32 %s366_s1, 8 }
  0x38   : > { %s1749_s18 = scalar_lea.vmem [#allocation9], %s1121_s16 }
  0x39   : > { %1534 = dma.done.wait (%p1688_p8), [#allocation11], 4096  }
  0x3a   : > { %1536 = vsyncadd (%p1688_p8), [#allocation11], 4294963200  ;;  %p1123_p1 = scmp.ne.s32.totalorder %s1551_s10, 0 }
  0x3c   : > { %448 = sbr.rel (%p1123_p1) target bundleno = 68 (0x44), region = 72 }
  0x41   : > { %v1566_v1 = vmov 0.0  }
  0x42   : > { %449 = vst [vmem:[#allocation2] sm:$0xff] %v1566_v1 }
  0x43   : > { %450 = vst [vmem:[#allocation3] sm:$0xff] %v1566_v1 }
  0x44 PF: > { %v1757_v2 = vld [vmem:[%s1749_s18 + $0x38] sm:$0xff]  ;;  %v1771_v6 = vld [vmem:[%s1749_s18 + $0x30] sm:$0xff]  ;;  %v1787_v10 = vld [vmem:[%s1749_s18 + $0x28] sm:$0xff]  ;;  %p1252_p2 = scmp.ne.s32.totalorder %s1551_s10, 1 }
  0x45   : > { %v1760_v3 = vld [vmem:[%s1749_s18 + $0x78] sm:$0xff]  ;;  %724 = vmatpush.bf16.msra.mxu0 %v1757_v2  ;;  %v1774_v7 = vld [vmem:[%s1749_s18 + $0x70] sm:$0xff]  ;;  %v1790_v11 = vld [vmem:[%s1749_s18 + $0x68] sm:$0xff]  ;;  %s1925_s23 = sld [smem:[#allocation21_spill]] (!%p1252_p2) }
  0x46   : > { %v1763_v4 = vld [vmem:[%s1749_s18 + $0xb8] sm:$0xff]  ;;  %737 = vmatpush.bf16.msra.mxu1 %v1760_v3  ;;  %v1779_v8 = vld [vmem:[%s1749_s18 + $0xb0] sm:$0xff]  ;;  %v1795_v12 = vld [vmem:[%s1749_s18 + $0xa8] sm:$0xff]  ;;  %s1926_s24 = sld [smem:[#allocation22_spill]] (!%p1252_p2) }
  0x47   : > { %v1766_v5 = vld [vmem:[%s1749_s18 + $0xf8] sm:$0xff]  ;;  %750 = vmatpush.bf16.msra.mxu2 %v1763_v4  ;;  %v1782_v9 = vld [vmem:[%s1749_s18 + $0xf0] sm:$0xff]  ;;  %v1798_v13 = vld [vmem:[%s1749_s18 + $0xe8] sm:$0xff] }
  0x48   : > { %763 = vmatpush.bf16.msra.mxu3 %v1766_v5  ;;  %v1803_v14 = vld [vmem:[%s1749_s18 + $0x20] sm:$0xff]  ;;  %v1819_v18 = vld [vmem:[%s1749_s18 + $0x18] sm:$0xff]  ;;  %v1262_v22 = vld [vmem:[%s1749_s18 + $0x10] sm:$0xff] }
  0x49   : > { %725 = vmatpush.bf16.msra.mxu0 %v1771_v6  ;;  %v1806_v15 = vld [vmem:[%s1749_s18 + $0x60] sm:$0xff]  ;;  %v1822_v19 = vld [vmem:[%s1749_s18 + $0x58] sm:$0xff]  ;;  %v1270_v23 = vld [vmem:[%s1749_s18 + $0x50] sm:$0xff] }
  0x4a   : > { %738 = vmatpush.bf16.msra.mxu1 %v1774_v7  ;;  %v1811_v16 = vld [vmem:[%s1749_s18 + $0xa0] sm:$0xff]  ;;  %v1279_v20 = vld [vmem:[%s1749_s18 + $0x98] sm:$0xff]  ;;  %v1278_v24 = vld [vmem:[%s1749_s18 + $0x90] sm:$0xff] }
  0x4b   : > { %751 = vmatpush.bf16.msra.mxu2 %v1779_v8  ;;  %v1814_v17 = vld [vmem:[%s1749_s18 + $0xe0] sm:$0xff]  ;;  %v1287_v21 = vld [vmem:[%s1749_s18 + $0xd8] sm:$0xff]  ;;  %v1286_v25 = vld [vmem:[%s1749_s18 + $0xd0] sm:$0xff] }
  0x4c   : > { %764 = vmatpush.bf16.msra.mxu3 %v1782_v9  ;;  %v1261_v26 = vld [vmem:[%s1749_s18 + $0x8] sm:$0xff]  ;;  %v516_v31 = vld [vmem:[%s1735_s15] sm:$0xff] }
  0x4d   : > { %726 = vmatpush.bf16.msra.mxu0 %v1787_v10  ;;  %v1269_v27 = vld [vmem:[%s1749_s18 + $0x48] sm:$0xff]  ;;  %v1260_v32 = vld [vmem:[%s1749_s18] sm:$0xff]  ;;  %v520_v38 = vunpack.c.l.b16 %v516_v31  ;;  %v521_v39 = vunpack.c.h.b16 %v516_v31 }
  0x4e   : > { %739 = vmatpush.bf16.msra.mxu1 %v1790_v11  ;;  %v1277_v28 = vld [vmem:[%s1749_s18 + $0x88] sm:$0xff]  ;;  %v1268_v33 = vld [vmem:[%s1749_s18 + $0x40] sm:$0xff] }
  0x4f   : > { %752 = vmatpush.bf16.msra.mxu2 %v1795_v12  ;;  %v1285_v29 = vld [vmem:[%s1749_s18 + $0xc8] sm:$0xff]  ;;  %v1276_v36 = vld [vmem:[%s1749_s18 + $0x80] sm:$0xff]  ;;  %v524_v42 = vpack.c.b16 %v520_v38, %v520_v38  ;;  %v525_v43 = vpack.c.b16 %v521_v39, %v521_v39 }
  0x50   : > { %765 = vmatpush.bf16.msra.mxu3 %v1798_v13  ;;  %v517_v30 = vld [vmem:[%s1735_s15 + $0x8] sm:$0xff]  ;;  %v1284_v37 = vld [vmem:[%s1749_s18 + $0xc0] sm:$0xff] }
  0x51   : > { %727 = vmatpush.bf16.msra.mxu0 %v1803_v14  ;;  %v522_v34 = vunpack.c.l.b16 %v517_v30  ;;  %v523_v35 = vunpack.c.h.b16 %v517_v30  ;;  %v779_v44 = vld [vmem:[%s1743_s9] sm:$0xff]  ;;  %v780_v45 = vld [vmem:[%s1743_s9 + $0x8] sm:$0xff] }
  0x52   : > { %740 = vmatpush.bf16.msra.mxu1 %v1806_v15  ;;  %v783_v46 = vunpack.c.l.b16 %v779_v44  ;;  %v784_v47 = vunpack.c.h.b16 %v779_v44  ;;  %v785_v48 = vunpack.c.l.b16 %v780_v45  ;;  %v786_v49 = vunpack.c.h.b16 %v780_v45  ;;  %v515_v60 = vld [vmem:[#allocation2] sm:$0xff] }
  0x53   : > { %753 = vmatpush.bf16.msra.mxu2 %v1811_v16  ;;  %v526_v40 = vpack.c.b16 %v522_v34, %v522_v34  ;;  %v527_v41 = vpack.c.b16 %v523_v35, %v523_v35 }
  0x54   : > { %766 = vmatpush.bf16.msra.mxu3 %v1814_v17  ;;  %v787_v50 = vpack.c.b16 %v783_v46, %v783_v46  ;;  %v788_v51 = vpack.c.b16 %v784_v47, %v784_v47  ;;  %v789_v52 = vpack.c.b16 %v785_v48, %v785_v48  ;;  %v790_v53 = vpack.c.b16 %v786_v49, %v786_v49 }
  0x55   : > { %728 = vmatpush.bf16.msra.mxu0 %v1819_v18 }
  0x56   : > { %741 = vmatpush.bf16.msra.mxu1 %v1822_v19 }
  0x57   : > { %754 = vmatpush.bf16.msra.mxu2 %v1279_v20 }
  0x58   : > { %767 = vmatpush.bf16.msra.mxu3 %v1287_v21 }
  0x59   : > { %729 = vmatpush.bf16.msra.mxu0 %v1262_v22 }
  0x5a   : > { %742 = vmatpush.bf16.msra.mxu1 %v1270_v23 }
  0x5b   : > { %755 = vmatpush.bf16.msra.mxu2 %v1278_v24 }
  0x5c   : > { %768 = vmatpush.bf16.msra.mxu3 %v1286_v25 }
  0x5d   : > { %730 = vmatpush.bf16.msra.mxu0 %v1261_v26 }
  0x5e   : > { %743 = vmatpush.bf16.msra.mxu1 %v1269_v27 }
  0x5f   : > { %756 = vmatpush.bf16.msra.mxu2 %v1277_v28 }
  0x60   : > { %769 = vmatpush.bf16.msra.mxu3 %v1285_v29 }
  0x61   : > { %731 = vmatpush.bf16.msra.mxu0 %v1260_v32 }
  0x62   : > { %744 = vmatpush.bf16.msra.mxu1 %v1268_v33 }
  0x63   : > { %757 = vmatpush.bf16.msra.mxu2 %v1276_v36 }
  0x64   : > { %770 = vmatpush.bf16.msra.mxu3 %v1284_v37  ;;  %732 = vmatmul.bf16.vlgmr.msra.gmra.mxu0 %v524_v42 }
  0x65   : > { %795 = vmatpush.bf16.msrb.mxu0 %v1757_v2  ;;  %745 = vmatmul.bf16.vlgmr.msra.gmra.mxu1 %v525_v43 }
  0x66   : > { %808 = vmatpush.bf16.msrb.mxu1 %v1760_v3  ;;  %758 = vmatmul.bf16.vlgmr.msra.gmra.mxu2 %v526_v40 }
  0x67   : > { %821 = vmatpush.bf16.msrb.mxu2 %v1763_v4  ;;  %771 = vmatmul.bf16.vlgmr.msra.gmra.mxu3 %v527_v41 }
  0x68   : > { %834 = vmatpush.bf16.msrb.mxu3 %v1766_v5 }
  0x69   : > { %796 = vmatpush.bf16.msrb.mxu0 %v1771_v6 }
  0x6a   : > { %809 = vmatpush.bf16.msrb.mxu1 %v1774_v7 }
  0x6b   : > { %822 = vmatpush.bf16.msrb.mxu2 %v1779_v8 }
  0x6c   : > { %835 = vmatpush.bf16.msrb.mxu3 %v1782_v9 }
  0x6d   : > { %797 = vmatpush.bf16.msrb.mxu0 %v1787_v10 }
  0x6e   : > { %810 = vmatpush.bf16.msrb.mxu1 %v1790_v11  ;;  %v778_v11 = vld [vmem:[#allocation3] sm:$0xff] }
  0x6f   : > { %823 = vmatpush.bf16.msrb.mxu2 %v1795_v12 }
  0x70   : > { %836 = vmatpush.bf16.msrb.mxu3 %v1798_v13 }
  0x71   : > { %798 = vmatpush.bf16.msrb.mxu0 %v1803_v14 }
  0x72   : > { %811 = vmatpush.bf16.msrb.mxu1 %v1806_v15 }
  0x73   : > { %824 = vmatpush.bf16.msrb.mxu2 %v1811_v16 }
  0x74   : > { %837 = vmatpush.bf16.msrb.mxu3 %v1814_v17 }
  0x75   : > { %799 = vmatpush.bf16.msrb.mxu0 %v1819_v18 }
  0x76   : > { %812 = vmatpush.bf16.msrb.mxu1 %v1822_v19 }
  0x77   : > { %825 = vmatpush.bf16.msrb.mxu2 %v1279_v20 }
  0x78   : > { %838 = vmatpush.bf16.msrb.mxu3 %v1287_v21 }
  0x79   : > { %800 = vmatpush.bf16.msrb.mxu0 %v1262_v22 }
  0x7a   : > { %813 = vmatpush.bf16.msrb.mxu1 %v1270_v23 }
  0x7b   : > { %826 = vmatpush.bf16.msrb.mxu2 %v1278_v24 }
  0x7c   : > { %839 = vmatpush.bf16.msrb.mxu3 %v1286_v25 }
  0x7d   : > { %801 = vmatpush.bf16.msrb.mxu0 %v1261_v26 }
  0x7e   : > { %814 = vmatpush.bf16.msrb.mxu1 %v1269_v27 }
  0x7f   : > { %827 = vmatpush.bf16.msrb.mxu2 %v1277_v28 }
  0x80   : > { %840 = vmatpush.bf16.msrb.mxu3 %v1285_v29 }
  0x81   : > { %802 = vmatpush.bf16.msrb.mxu0 %v1260_v32 }
  0x82   : > { %815 = vmatpush.bf16.msrb.mxu1 %v1268_v33 }
  0x83   : > { %828 = vmatpush.bf16.msrb.mxu2 %v1276_v36 }
  0x84   : > { %841 = vmatpush.bf16.msrb.mxu3 %v1284_v37  ;;  %803 = vmatmul.bf16.vlgmr.msrb.gmra.mxu0 %v787_v50 }
  0x85   : > { %816 = vmatmul.bf16.vlgmr.msrb.gmra.mxu1 %v788_v51 }
  0x86   : > { %829 = vmatmul.bf16.vlgmr.msrb.gmra.mxu2 %v789_v52 }
  0x87   : > { %842 = vmatmul.bf16.vlgmr.msrb.gmra.mxu3 %v790_v53 }
  0xe1   : > { %v733_v54 = vpop.f32.mrf.mxu0 }
  0xe2   : > { %v746_v55 = vpop.f32.mrf.mxu1 }
  0xe3   : > { %v747_v56 = vadd.f32 %v746_v55, %v733_v54 }
  0xe9   : > { %v759_v57 = vpop.f32.mrf.mxu2  ;;  %v735_v62 = vpop.f32.mrf.mxu0 }
  0xea   : > { %v772_v58 = vpop.f32.mrf.mxu3  ;;  %v760_v59 = vadd.f32 %v759_v57, %v747_v56  ;;  %v748_v63 = vpop.f32.mrf.mxu1 }
  0xec   : > { %v773_v61 = vadd.f32 %v772_v58, %v760_v59 }
  0xee   : > { %v776_v0 = vadd.f32 %v773_v61, %v515_v60 }
  0xf0   : > { %777 = vst [vmem:[#allocation2] sm:$0xff] %v776_v0 }
  0xf1   : > { %v761_v1 = vpop.f32.mrf.mxu2 }
  0xf2   : > { %v774_v2 = vpop.f32.mrf.mxu3 }
 0x101   : > { %v804_v3 = vpop.f32.mrf.mxu0 }
 0x102   : > { %v817_v4 = vpop.f32.mrf.mxu1 }
 0x103   : > { %v818_v5 = vadd.f32 %v817_v4, %v804_v3 }
 0x109   : > { %v830_v6 = vpop.f32.mrf.mxu2  ;;  %v806_v9 = vpop.f32.mrf.mxu0 }
 0x10a   : > { %v843_v7 = vpop.f32.mrf.mxu3  ;;  %v831_v8 = vadd.f32 %v830_v6, %v818_v5  ;;  %v819_v10 = vpop.f32.mrf.mxu1 }
 0x10c   : > { %v844_v12 = vadd.f32 %v843_v7, %v831_v8 }
 0x10e   : > { %v847_v13 = vadd.f32 %v844_v12, %v778_v11  ;;  %852 = sbr.rel (%p1252_p2) target bundleno = 588 (0x24c), region = 76 }
 0x110   : > { %848 = vst [vmem:[#allocation3] sm:$0xff] %v847_v13 }
 0x111   : > { %v832_v14 = vpop.f32.mrf.mxu2 }
 0x112   : > { %v845_v15 = vpop.f32.mrf.mxu3 }
 0x113   : > { %v881_v16 = vld [vmem:[#allocation10 + $0x78] sm:$0xff]  ;;  %v880_v17 = vld [vmem:[#allocation10 + $0x70] sm:$0xff]  ;;  %v879_v20 = vld [vmem:[#allocation10 + $0x68] sm:$0xff]  ;;  %vm974_vm3 = vcmask 7168  }
 0x114   : > { %v897_v18 = vld [vmem:[#allocation10 + $0xf8] sm:$0xff]  ;;  %902 = vmatpush.msra.mxu0 %v881_v16  ;;  %v896_v19 = vld [vmem:[#allocation10 + $0xf0] sm:$0xff]  ;;  %v895_v21 = vld [vmem:[#allocation10 + $0xe8] sm:$0xff] }
 0x115   : > { %922 = vmatpush.msra.mxu1 %v897_v18  ;;  %v878_v22 = vld [vmem:[#allocation10 + $0x60] sm:$0xff]  ;;  %v877_v24 = vld [vmem:[#allocation10 + $0x58] sm:$0xff]  ;;  %v876_v26 = vld [vmem:[#allocation10 + $0x50] sm:$0xff] }
 0x116   : > { %903 = vmatpush.msra.mxu0 %v880_v17  ;;  %v894_v23 = vld [vmem:[#allocation10 + $0xe0] sm:$0xff]  ;;  %v893_v25 = vld [vmem:[#allocation10 + $0xd8] sm:$0xff]  ;;  %v892_v27 = vld [vmem:[#allocation10 + $0xd0] sm:$0xff] }
 0x117   : > { %923 = vmatpush.msra.mxu1 %v896_v19  ;;  %v875_v28 = vld [vmem:[#allocation10 + $0x48] sm:$0xff]  ;;  %v874_v30 = vld [vmem:[#allocation10 + $0x40] sm:$0xff]  ;;  %v873_v32 = vld [vmem:[#allocation10 + $0x38] sm:$0xff] }
 0x118   : > { %904 = vmatpush.msra.mxu0 %v879_v20  ;;  %v891_v29 = vld [vmem:[#allocation10 + $0xc8] sm:$0xff]  ;;  %v890_v31 = vld [vmem:[#allocation10 + $0xc0] sm:$0xff]  ;;  %v889_v33 = vld [vmem:[#allocation10 + $0xb8] sm:$0xff] }
 0x119   : > { %924 = vmatpush.msra.mxu1 %v895_v21  ;;  %v872_v34 = vld [vmem:[#allocation10 + $0x30] sm:$0xff]  ;;  %v1373_v36 = vld [vmem:[%s1898_s3] ss:$0 sm:$0xff]  ;;  %v870_v41 = vld [vmem:[#allocation10 + $0x20] sm:$0xff] }
 0x11a   : > { %905 = vmatpush.msra.mxu0 %v878_v22  ;;  %v888_v35 = vld [vmem:[#allocation10 + $0xb0] sm:$0xff]  ;;  %v871_v39 = vld [vmem:[#allocation10 + $0x28] sm:$0xff]  ;;  %v886_v42 = vld [vmem:[#allocation10 + $0xa0] sm:$0xff] }
 0x11b   : > { %925 = vmatpush.msra.mxu1 %v894_v23  ;;  %v854_v37 = vld [vmem:[#allocation2] sm:$0xff]  ;;  %v859_v38 = vld [vmem:[#allocation3] sm:$0xff]  ;;  %v866_v54 = vld [vmem:[#allocation10] sm:$0xff] }
 0x11c   : > { %906 = vmatpush.msra.mxu0 %v877_v24  ;;  %v887_v40 = vld [vmem:[#allocation10 + $0xa8] sm:$0xff]  ;;  %v858_v43 = vadd.f32 %v1373_v36, %v854_v37  ;;  %v860_v44 = vadd.f32 %v1373_v36, %v859_v38  ;;  %v869_v45 = vld [vmem:[#allocation10 + $0x18] sm:$0xff]  ;;  %v868_v47 = vld [vmem:[#allocation10 + $0x10] sm:$0xff] }
 0x11d   : > { %926 = vmatpush.msra.mxu1 %v893_v25  ;;  %v885_v46 = vld [vmem:[#allocation10 + $0x98] sm:$0xff]  ;;  %v884_v48 = vld [vmem:[#allocation10 + $0x90] sm:$0xff]  ;;  %v867_v52 = vld [vmem:[#allocation10 + $0x8] sm:$0xff] }
 0x11e   : > { %907 = vmatpush.msra.mxu0 %v876_v26  ;;  %v861_v49 = vmul.f32 %v858_v43, %v858_v43  ;;  %v862_v50 = vmul.f32 %v860_v44, %v860_v44  ;;  %v864_v51 = vsub.f32 %v858_v43, %v860_v44  ;;  %v883_v53 = vld [vmem:[#allocation10 + $0x88] sm:$0xff]  ;;  %v882_v56 = vld [vmem:[#allocation10 + $0x80] sm:$0xff]  ;;  %v1376_v2 = vld [vmem:[#allocation4] ss:$0 sm:$0xff] }
 0x11f   : > { %927 = vmatpush.msra.mxu1 %v892_v27  ;;  %v1374_v58 = vld [vmem:[%s1900_s5] ss:$0 sm:$0xff] }
 0x120   : > { %908 = vmatpush.msra.mxu0 %v875_v28  ;;  %v863_v55 = vadd.f32 %v862_v50, %v861_v49  ;;  %v865_v57 = vmul.f32 %v864_v51, %v864_v51  ;;  %v1375_v63 = vld [vmem:[%s1925_s23] ss:$0 sm:$0xff] }
 0x121   : > { %928 = vmatpush.msra.mxu1 %v891_v29 }
 0x122   : > { %909 = vmatpush.msra.mxu0 %v874_v30 }
 0x123   : > { %929 = vmatpush.msra.mxu1 %v890_v31 }
 0x124   : > { %910 = vmatpush.msra.mxu0 %v873_v32 }
 0x125   : > { %930 = vmatpush.msra.mxu1 %v889_v33 }
 0x126   : > { %911 = vmatpush.msra.mxu0 %v872_v34 }
 0x127   : > { %931 = vmatpush.msra.mxu1 %v888_v35 }
 0x128   : > { %912 = vmatpush.msra.mxu0 %v871_v39 }
 0x129   : > { %932 = vmatpush.msra.mxu1 %v887_v40 }
 0x12a   : > { %913 = vmatpush.msra.mxu0 %v870_v41 }
 0x12b   : > { %933 = vmatpush.msra.mxu1 %v886_v42 }
 0x12c   : > { %914 = vmatpush.msra.mxu0 %v869_v45 }
 0x12d   : > { %934 = vmatpush.msra.mxu1 %v885_v46 }
 0x12e   : > { %915 = vmatpush.msra.mxu0 %v868_v47 }
 0x12f   : > { %935 = vmatpush.msra.mxu1 %v884_v48 }
 0x130   : > { %916 = vmatpush.msra.mxu0 %v867_v52 }
 0x131   : > { %936 = vmatpush.msra.mxu1 %v883_v53 }
 0x132   : > { %917 = vmatpush.msra.mxu0 %v866_v54 }
 0x133   : > { %937 = vmatpush.msra.mxu1 %v882_v56  ;;  %918 = vmatmul.f32.vlgmr.msra.gmra.mxu0 %v863_v55 }
 0x134   : > { %938 = vmatmul.f32.vlgmr.msra.gmra.mxu1 %v865_v57 }
 0x1b0   : > { %v919_v59 = vpop.f32.mrf.mxu0 }
 0x1b1   : > { %v939_v60 = vpop.f32.mrf.mxu1  ;;  %v920_v61 = vadd.f32 %v1374_v58, %v919_v59 }
 0x1b3   : > { %v940_v62 = vadd.f32 %v939_v60, %v920_v61 }
 0x1b5   : > { %v942_v0 = vmax.f32 %v940_v62, 0.0 }
 0x1b7   : > { %v947_v1 = vmul.f32 %v1375_v63, %v942_v0 }
 0x1b9   : > { %948 = vadd.xlane.f32.xlu0 %v947_v1 }
 0x22c   : > { %v949_v3 = vpop.xlane.xlu0 %948 }
 0x22d   : > { %v954_v4 = vadd.f32 %v1376_v2, %v949_v3 }
 0x22f   : > { %v1253_v5 = vmul.f32 -1.442695, %v954_v4 }
 0x231   : > { %1377 = vpow2.f32 %v1253_v5 }
 0x237   : > { %v1378_v6 = vpop.eup %1377 }
 0x238   : > { %v958_v7 = vadd.f32 1.0, %v1378_v6 }
 0x23a   : > { %1379 = vrcp.f32 %v958_v7  ;;  %v970_v11 = vand.u32 2147483648, %v958_v7  ;;  %v968_v13 = vand.u32 2147483647, %v958_v7  ;;  %vm964_vm1 = vweird.f32 %v958_v7 }
 0x23c   : > { %v971_v15 = vor.u32 1.1754944e-38, %v970_v11  ;;  %vm969_vm4 = vcmp.eq.f32.partialorder %v968_v13, 8.507059e+37 }
 0x240   : > { %v1380_v8 = vpop.eup %1379 }
 0x241   : > { %v960_v9 = vmul.f32 %v1380_v8, %v958_v7  ;;  %vm965_vm0 = vweird.f32 %v1380_v8 }
 0x242   : > { %vm966_vm2 = vmor %vm964_vm1, %vm965_vm0 }
 0x243   : > { %v961_v10 = vsub.f32 1.0, %v960_v9 }
 0x245   : > { %v962_v12 = vmul.f32 %v1380_v8, %v961_v10 }
 0x247   : > { %v963_v14 = vadd.f32 %v1380_v8, %v962_v12 }
 0x249   : > { %v967_v16 = vsel %vm966_vm2, %v1380_v8, %v963_v14 }
 0x24a   : > { %v972_v17 = vsel %vm969_vm4, %v971_v15, %v967_v16 }
 0x24b   : > { %975 = vst.msk [vmem:[%s1926_s24] sm:$0xff] %vm974_vm3, %v972_v17 }
 0x24c PF: > { %s27_s12 = sadd.s32 1, %s1559_s12   ;;  %s1927_s25 = sld [smem:[#allocation15_spill]] }
 0x24d   : > { %p24_p3 = scmp.ge.s32.totalorder %s27_s12, 4   ;;  %s1928_s9 = sld [smem:[#allocation17_spill]] }
 0x24e   : > { %s1929_s17 = sld [smem:[#allocation16_spill]]  ;;  %s1930_s29 = smov %s1543_s30 }
 0x24f   : > { %s1932_s10 = smov %s1555_s11 }
 0x250   :  { %26 = sbr.rel (!%p24_p3) target bundleno = 13 (0xd), region = 128 }
 0x252   : > { %s1931_s30 = smov %s1927_s25 }
 0x254   : > { %s1933_s11 = smov %s1929_s17 }
 0x255   :  { %995 = vsyncpa [#allocation6], 1 }
 0x256   :  { %997 = vsyncpa [#allocation6 + $0x1], 1 }
 0x257   :  { %998 = vsyncpa [#allocation8], 1 }
 0x258   :  { %1000 = vsyncpa [#allocation8 + $0x1], 1 }
 0x259   :  { %1001 = vsyncpa [#allocation11], 1 }

</bundles_post_ra>
